<compile_context>
chip_gen: v7x
topology: tpu7x:2x2x1
jax: 0.10.0
libtpu: 0.0.40
codegen_flags: <defaults>
</compile_context>

<pallas_src>
import functools
import math

import jax
import jax.numpy as jnp
from jax import lax
from jax.experimental import pallas as pl
from jax.experimental.pallas import tpu as pltpu

_MASK_VALUE = -1e30
# Scoped VMEM: large enough for the bigger row tiles (v5e default is only
# 16 MiB), small enough to leave headroom on v7x's 64 MiB physical VMEM.
_VMEM_LIMIT = 48 * 1024 * 1024


def _cparams(dim_sem):
    return pltpu.CompilerParams(dimension_semantics=dim_sem,
                                vmem_limit_bytes=_VMEM_LIMIT)


# ----------------------------- tile-size helper -------------------------------

def _tile(dim, target, quantum):
    """Largest multiple of `quantum` <= target that divides dim, else full dim."""
    if dim <= target:
        return dim
    t = (target // quantum) * quantum
    while t >= quantum:
        if dim % t == 0:
            return t
        t -= quantum
    return dim


# ----------------------------- in-kernel helpers ------------------------------

def _layernorm_f32(v, g, b, eps=1e-5):
    v = v.astype(jnp.float32)
    mu = jnp.mean(v, axis=-1, keepdims=True)
    var = jnp.mean(jnp.square(v - mu), axis=-1, keepdims=True)
    return (v - mu) * lax.rsqrt(var + eps) * g + b


def _gelu_tanh(x):
    # matches torch.nn.GELU(approximate='tanh'); keep in f32 (no bf16 VPU on v5e)
    c = math.sqrt(2.0 / math.pi)
    return 0.5 * x * (1.0 + jnp.tanh(c * (x + 0.044715 * x * x * x)))


# ------------------------ fused LayerNorm + Linear -----------------------------

def _ln_linear_kernel(x_ref, g_ref, bln_ref, w_ref, b_ref, o_ref, xn_sc):
    # LayerNorm is computed once per row tile (j == 0) and cached in bf16.
    @pl.when(pl.program_id(1) == 0)
    def _():
        xn_sc[...] = _layernorm_f32(x_ref[...], g_ref[...], bln_ref[...]
                                    ).astype(jnp.bfloat16)

    out = jnp.dot(xn_sc[...], w_ref[...],
                  preferred_element_type=jnp.float32) + b_ref[...]
    o_ref[...] = out.astype(o_ref.dtype)


def ln_linear(x2d, g, bln, w, b, out_dtype, tm_target=512, tn_target=512):
    R, C = x2d.shape
    N = w.shape[1]
    tm = _tile(R, tm_target, 8)
    tn = _tile(N, tn_target, 128)
    return pl.pallas_call(
        _ln_linear_kernel,
        out_shape=jax.ShapeDtypeStruct((R, N), out_dtype),
        grid_spec=pltpu.PrefetchScalarGridSpec(
            num_scalar_prefetch=0,
            grid=(R // tm, N // tn),
            in_specs=[
                pl.BlockSpec((tm, C), lambda i, j: (i, 0)),
                pl.BlockSpec((1, C), lambda i, j: (0, 0)),
                pl.BlockSpec((1, C), lambda i, j: (0, 0)),
                pl.BlockSpec((C, tn), lambda i, j: (0, j)),
                pl.BlockSpec((1, tn), lambda i, j: (0, j)),
            ],
            out_specs=pl.BlockSpec((tm, tn), lambda i, j: (i, j)),
            scratch_shapes=[pltpu.VMEM((tm, C), jnp.bfloat16)],
        ),
        # Column axis must be 'arbitrary': the LN cache is carried across j.
        compiler_params=_cparams(("parallel", "arbitrary")),
    )(x2d, g, bln, w, b)


# ------------------------ Linear + residual add --------------------------------

def _linear_residual_kernel(y_ref, w_ref, b_ref, res_ref, o_ref):
    y = y_ref[...].astype(jnp.bfloat16)
    out = jnp.dot(y, w_ref[...], preferred_element_type=jnp.float32) + b_ref[...]
    o_ref[...] = (res_ref[...] + out).astype(o_ref.dtype)


def linear_residual(y2d, w, b, res2d, tm_target=512, tn_target=512):
    R, Cin = y2d.shape
    N = w.shape[1]
    tm = _tile(R, tm_target, 8)
    tn = _tile(N, tn_target, 128)
    return pl.pallas_call(
        _linear_residual_kernel,
        out_shape=jax.ShapeDtypeStruct((R, N), jnp.float32),
        grid_spec=pltpu.PrefetchScalarGridSpec(
            num_scalar_prefetch=0,
            grid=(R // tm, N // tn),
            in_specs=[
                pl.BlockSpec((tm, Cin), lambda i, j: (i, 0)),
                pl.BlockSpec((Cin, tn), lambda i, j: (0, j)),
                pl.BlockSpec((1, tn), lambda i, j: (0, j)),
                pl.BlockSpec((tm, tn), lambda i, j: (i, j)),
            ],
            out_specs=pl.BlockSpec((tm, tn), lambda i, j: (i, j)),
        ),
        compiler_params=_cparams(("parallel", "parallel")),
    )(y2d, w, b, res2d)


# ------------------------ causal flash attention --------------------------------

def _attention_kernel(n_head, head_dim, tq, tkv,
                      qi_ref, kj_ref, q_ref, k_ref, v_ref, o_ref,
                      m_sc, l_sc, acc_sc):
    H, hd = n_head, head_dim
    p = pl.program_id(1)
    qi = qi_ref[p]
    kj = kj_ref[p]
    # last kv tile touching the causal region of this q tile
    last_kj = ((qi + 1) * tq - 1) // tkv

    @pl.when(kj == 0)
    def _():
        m_sc[...] = jnp.full_like(m_sc, _MASK_VALUE)
        l_sc[...] = jnp.zeros_like(l_sc)
        acc_sc[...] = jnp.zeros_like(acc_sc)

    scale = 1.0 / math.sqrt(hd)
    rows = qi * tq + lax.broadcasted_iota(jnp.int32, (tq, tkv), 0)
    cols = kj * tkv + lax.broadcasted_iota(jnp.int32, (tq, tkv), 1)
    causal = cols <= rows

    qall = q_ref[0]    # (tq,  C) bf16  -- Q slab only
    kall = k_ref[0]    # (tkv, C) bf16  -- K slab only
    vall = v_ref[0]    # (tkv, C) bf16  -- V slab only

    # TODO(synk): batch heads into a single 3-D einsum (head-major relayout) to
    # densify the MXU push stream; kept as an unrolled per-head loop here.
    for h in range(H):
        qh = qall[:, h * hd:(h + 1) * hd]
        kh = kall[:, h * hd:(h + 1) * hd]
        vh = vall[:, h * hd:(h + 1) * hd]
        # (tq, hd) x (tkv, hd) contracting hd -> (tq, tkv); no transposes.
        s = lax.dot_general(qh, kh, (((1,), (1,)), ((), ())),
                            preferred_element_type=jnp.float32) * scale
        s = jnp.where(causal, s, _MASK_VALUE)
        m_old = m_sc[h]                                       # (tq, hd), lane-bcast
        m_new = jnp.maximum(m_old, jnp.max(s, axis=-1, keepdims=True))
        alpha = jnp.exp(m_old - m_new)                        # (tq, hd)
        pmat = jnp.exp(s - m_new[:, 0:1])                     # (tq, tkv)
        l_sc[h] = alpha * l_sc[h] + jnp.sum(pmat, axis=-1, keepdims=True)
        acc_sc[h] = alpha * acc_sc[h] + jnp.dot(
            pmat.astype(jnp.bfloat16), vh, preferred_element_type=jnp.float32)
        m_sc[h] = m_new

    @pl.when(kj == last_kj)
    def _():
        for h in range(H):
            o_ref[0, :, h * hd:(h + 1) * hd] = (
                acc_sc[h] / l_sc[h]).astype(o_ref.dtype)


def causal_attention(qkv, n_head, tq_target=256, tkv_target=256):
    B, T, C3 = qkv.shape
    C = C3 // 3
    hd = C // n_head
    tq = _tile(T, tq_target, 128)
    tkv = _tile(T, tkv_target, 128)
    nq, nkv = T // tq, T // tkv

    # Enumerate only lower-triangle (q-tile, kv-tile) pairs: fully-masked kv
    # tiles are never DMA'd and never become grid steps.
    pq, pk = [], []
    for qi in range(nq):
        last_kj = ((qi + 1) * tq - 1) // tkv
        for kj in range(last_kj + 1):
            pq.append(qi)
            pk.append(kj)
    qi_tbl = jnp.asarray(pq, dtype=jnp.int32)
    kj_tbl = jnp.asarray(pk, dtype=jnp.int32)
    n_pairs = len(pq)

    kernel = functools.partial(_attention_kernel, n_head, hd, tq, tkv)
    return pl.pallas_call(
        kernel,
        out_shape=jax.ShapeDtypeStruct((B, T, C), jnp.bfloat16),
        grid_spec=pltpu.PrefetchScalarGridSpec(
            num_scalar_prefetch=2,
            grid=(B, n_pairs),
            in_specs=[
                # Q / K / V slabs of the fused qkv tensor: last-axis block 0/1/2.
                pl.BlockSpec((1, tq, C), lambda b, p, qt, kt: (b, qt[p], 0)),
                pl.BlockSpec((1, tkv, C), lambda b, p, qt, kt: (b, kt[p], 1)),
                pl.BlockSpec((1, tkv, C), lambda b, p, qt, kt: (b, kt[p], 2)),
            ],
            out_specs=pl.BlockSpec((1, tq, C),
                                   lambda b, p, qt, kt: (b, qt[p], 0)),
            scratch_shapes=[
                pltpu.VMEM((n_head, tq, hd), jnp.float32),   # running max (bcast)
                pltpu.VMEM((n_head, tq, hd), jnp.float32),   # running sum (bcast)
                pltpu.VMEM((n_head, tq, hd), jnp.float32),   # output accumulator
            ]),
        compiler_params=_cparams(("parallel", "arbitrary")),
    )(qi_tbl, kj_tbl, qkv, qkv, qkv)


# ------------------------ fused LayerNorm + MLP ---------------------------------

def _mlp_kernel(x_ref, g_ref, bln_ref, wfc_ref, bfc_ref, wfc2_ref, bfc2_ref,
                o_ref, xn_sc, acc_sc):
    j = pl.program_id(1)
    nj = pl.num_programs(1)

    @pl.when(j == 0)
    def _():
        xn = _layernorm_f32(x_ref[...], g_ref[...], bln_ref[...])
        xn_sc[...] = xn.astype(jnp.bfloat16)
        acc_sc[...] = jnp.zeros_like(acc_sc)

    hid = jnp.dot(xn_sc[...], wfc_ref[...],
                  preferred_element_type=jnp.float32) + bfc_ref[...]
    hid = _gelu_tanh(hid)
    acc_sc[...] += jnp.dot(hid.astype(jnp.bfloat16), wfc2_ref[...],
                           preferred_element_type=jnp.float32)

    @pl.when(j == nj - 1)
    def _():
        o_ref[...] = (x_ref[...] + acc_sc[...] + bfc2_ref[...]).astype(o_ref.dtype)


def mlp(x2d, g, bln, w_fc, b_fc, w_fc2, b_fc2, tm_target=512, tf_target=1024):
    R, C = x2d.shape
    FF = w_fc.shape[1]
    tm = _tile(R, tm_target, 8)
    tf = _tile(FF, tf_target, 128)
    return pl.pallas_call(
        _mlp_kernel,
        out_shape=jax.ShapeDtypeStruct((R, C), jnp.float32),
        grid_spec=pltpu.PrefetchScalarGridSpec(
            num_scalar_prefetch=0,
            grid=(R // tm, FF // tf),
            in_specs=[
                pl.BlockSpec((tm, C), lambda i, j: (i, 0)),
                pl.BlockSpec((1, C), lambda i, j: (0, 0)),
                pl.BlockSpec((1, C), lambda i, j: (0, 0)),
                pl.BlockSpec((C, tf), lambda i, j: (0, j)),
                pl.BlockSpec((1, tf), lambda i, j: (0, j)),
                pl.BlockSpec((tf, C), lambda i, j: (j, 0)),
                pl.BlockSpec((1, C), lambda i, j: (0, 0)),
            ],
            out_specs=pl.BlockSpec((tm, C), lambda i, j: (i, 0)),
            scratch_shapes=[
                pltpu.VMEM((tm, C), jnp.bfloat16),   # cached LayerNorm(x)
                pltpu.VMEM((tm, C), jnp.float32),    # ff-axis accumulator
            ]),
        compiler_params=_cparams(("parallel", "arbitrary")),
    )(x2d, g, bln, w_fc, b_fc, w_fc2, b_fc2)


# ------------------------ final LayerNorm + lm_head ------------------------------

def _lm_head_kernel(x_ref, g_ref, bln_ref, wte_ref, o_ref, xn_sc):
    @pl.when(pl.program_id(1) == 0)
    def _():
        xn_sc[...] = _layernorm_f32(x_ref[...], g_ref[...], bln_ref[...]
                                    ).astype(jnp.bfloat16)
    # contract against (tv, C) tied embedding directly: no wte.T materialization
    logits = lax.dot_general(xn_sc[...], wte_ref[...], (((1,), (1,)), ((), ())),
                             preferred_element_type=jnp.float32)
    o_ref[...] = logits.astype(o_ref.dtype)


def lm_head(x2d, lnf_g, lnf_b, wte, tm_target=1024, tv_target=1024):
    R, C = x2d.shape
    V = wte.shape[0]
    assert V % 128 == 0, "vocab must be padded to a multiple of 128 before lm_head"
    tm = _tile(R, tm_target, 8)
    tv = _tile(V, tv_target, 128)
    return pl.pallas_call(
        _lm_head_kernel,
        out_shape=jax.ShapeDtypeStruct((R, V), jnp.float32),
        grid_spec=pltpu.PrefetchScalarGridSpec(
            num_scalar_prefetch=0,
            grid=(R // tm, V // tv),
            in_specs=[
                pl.BlockSpec((tm, C), lambda i, j: (i, 0)),
                pl.BlockSpec((1, C), lambda i, j: (0, 0)),
                pl.BlockSpec((1, C), lambda i, j: (0, 0)),
                pl.BlockSpec((tv, C), lambda i, j: (j, 0)),
            ],
            out_specs=pl.BlockSpec((tm, tv), lambda i, j: (i, j)),
            scratch_shapes=[pltpu.VMEM((tm, C), jnp.bfloat16)],
        ),
        compiler_params=_cparams(("parallel", "arbitrary")),
    )(x2d, lnf_g, lnf_b, wte)


# ------------------------------- transformer block -------------------------------

def transformer_block(x, blk, n_head):
    B, T, C = x.shape
    x2 = x.reshape(B * T, C)
    # LN1 + QKV projection (bf16 output feeds the attention matmuls)
    qkv = ln_linear(x2, blk['ln1_g'], blk['ln1_b'],
                    blk['w_attn'], blk['b_attn'], out_dtype=jnp.bfloat16)
    y = causal_attention(qkv.reshape(B, T, 3 * C), n_head)        # (B, T, C) bf16
    # attention output projection + residual add (f32 residual stream)
    x2 = linear_residual(y.reshape(B * T, C), blk['w_proj'], blk['b_proj'], x2)
    # LN2 + MLP (+ residual), ff dim as K-reduction grid axis
    x2 = mlp(x2, blk['ln2_g'], blk['ln2_b'],
             blk['w_fc'], blk['b_fc'], blk['w_fc2'], blk['b_fc2'])
    return x2.reshape(B, T, C)


# ----------------------------- parameter setup -----------------------------------

def init_params(key, vocab_size, block_size, n_embd, n_layer):
    C = n_embd
    std = 0.02
    v_pad = ((vocab_size + 127) // 128) * 128   # lane-dense lm_head tiling

    def normal_bf16(k, shape):
        return (jax.random.normal(k, shape, dtype=jnp.float32) * std
                ).astype(jnp.bfloat16)

    keys = jax.random.split(key, 2 + 4 * n_layer)
    kit = iter(keys)

    wte = normal_bf16(next(kit), (vocab_size, C))
    wte = jnp.pad(wte, ((0, v_pad - vocab_size), (0, 0)))

    params = {
        # lm_head.weight is (V, C) in PyTorch; wte is tied to it (stored once,
        # padded to a multiple of 128 rows).
        'wte': wte,
        'wpe': (jax.random.normal(next(kit), (block_size, C),
                                  dtype=jnp.float32) * std),
        'lnf_g': jnp.ones((1, C), jnp.float32),
        'lnf_b': jnp.zeros((1, C), jnp.float32),
        'blocks': [],
    }
    for _ in range(n_layer):
        blk = {
            'ln1_g': jnp.ones((1, C), jnp.float32),
            'ln1_b': jnp.zeros((1, C), jnp.float32),
            # stored as (in, out) bf16 so the kernel does x @ W on the MXU
            'w_attn': normal_bf16(next(kit), (C, 3 * C)),
            'b_attn': jnp.zeros((1, 3 * C), jnp.float32),
            'w_proj': normal_bf16(next(kit), (C, C)),
            'b_proj': jnp.zeros((1, C), jnp.float32),
            'ln2_g': jnp.ones((1, C), jnp.float32),
            'ln2_b': jnp.zeros((1, C), jnp.float32),
            'w_fc': normal_bf16(next(kit), (C, 4 * C)),
            'b_fc': jnp.zeros((1, 4 * C), jnp.float32),
            'w_fc2': normal_bf16(next(kit), (4 * C, C)),
            'b_fc2': jnp.zeros((1, C), jnp.float32),
        }
        params['blocks'].append(blk)
    return params


# --------------------------------- forward ----------------------------------------

def gpt_forward(params, idx, n_head, vocab_size):
    B, T = idx.shape
    C = params['wpe'].shape[1]
    # embedding gather: plain-JAX glue (data-dependent gather, not a tile op)
    tok_emb = params['wte'][idx].astype(jnp.float32)       # (B, T, C)
    pos_emb = params['wpe'][jnp.arange(T)]                 # (T, C)
    x = tok_emb + pos_emb[None, :, :]
    for blk in params['blocks']:
        x = transformer_block(x, blk, n_head)
    logits = lm_head(x.reshape(B * T, C),
                     params['lnf_g'], params['lnf_b'], params['wte'])
    logits = logits.reshape(B, T, -1)[:, :, :vocab_size]   # drop vocab padding
    # TODO(synk): cross-entropy loss branch (targets) not implemented; matches
    # forward(idx, targets=None) which returns (logits, None).
    return logits, None


# ----------------------------------- main ------------------------------------------

if __name__ == "__main__":
    vocab_size = 64
    block_size = 8
    n_embd = 128       # multiple of 128 so last-axis Q/K/V slab blocking is lane-aligned
    n_head = 4
    n_layer = 2
    B, T = 2, 8

    key = jax.random.PRNGKey(0)
    kp, ki = jax.random.split(key)
    params = init_params(kp, vocab_size, block_size, n_embd, n_layer)
    idx = jax.random.randint(ki, (B, T), 0, vocab_size, dtype=jnp.int32)

    logits, loss = gpt_forward(params, idx, n_head, vocab_size)
    logits = jax.block_until_ready(logits)

    assert logits.shape == (B, T, vocab_size), logits.shape
    assert bool(jnp.all(jnp.isfinite(logits)))
    print("KERNEL_OK")
</pallas_src>

<mosaic_0001>
module attributes {stable_mosaic.version = 11 : i64} {
  func.func @_ln_linear_kernel(%arg0: i32, %arg1: i32, %arg2: memref<16x128xf32, #tpu.memory_space<vmem>>, %arg3: memref<1x128xf32, #tpu.memory_space<vmem>>, %arg4: memref<1x128xf32, #tpu.memory_space<vmem>>, %arg5: memref<128x384xbf16, #tpu.memory_space<vmem>>, %arg6: memref<1x384xf32, #tpu.memory_space<vmem>>, %arg7: memref<16x384xbf16, #tpu.memory_space<vmem>>, %arg8: memref<16x128xbf16, #tpu.memory_space<vmem>>) attributes {dimension_semantics = [#tpu.dimension_semantics<parallel>, #tpu.dimension_semantics<arbitrary>], iteration_bounds = array<i64: 1, 1>, scalar_prefetch = 0 : i64, scratch_operands = 1 : i64, tpu.core_type = #tpu.core_type<tc>, window_params = [{transform_indices = @transform_0, window_bounds = array<i64: 16, 128>}, {pipeline_mode = #tpu.pipeline_mode<synchronous>, transform_indices = @transform_1, window_bounds = array<i64: 1, 128>}, {pipeline_mode = #tpu.pipeline_mode<synchronous>, transform_indices = @transform_2, window_bounds = array<i64: 1, 128>}, {transform_indices = @transform_3, window_bounds = array<i64: 128, 384>}, {transform_indices = @transform_4, window_bounds = array<i64: 1, 384>}, {transform_indices = @transform_5, window_bounds = array<i64: 16, 384>}]} {
    %c0_i32 = arith.constant 0 : i32
    %0 = arith.cmpi eq, %arg1, %c0_i32 : i32
    %1 = arith.extui %0 : i1 to i32
    %c0_i32_0 = arith.constant 0 : i32
    %2 = arith.cmpi ne, %1, %c0_i32_0 : i32
    scf.if %2 {
      %c0_8 = arith.constant 0 : index
      %c0_9 = arith.constant 0 : index
      %11 = vector.load %arg2[%c0_8, %c0_9] : memref<16x128xf32, #tpu.memory_space<vmem>>, vector<16x128xf32>
      %c0_10 = arith.constant 0 : index
      %c0_11 = arith.constant 0 : index
      %12 = vector.load %arg3[%c0_10, %c0_11] : memref<1x128xf32, #tpu.memory_space<vmem>>, vector<1x128xf32>
      %c0_12 = arith.constant 0 : index
      %c0_13 = arith.constant 0 : index
      %13 = vector.load %arg4[%c0_12, %c0_13] : memref<1x128xf32, #tpu.memory_space<vmem>>, vector<1x128xf32>
      %cst_14 = arith.constant dense<0.000000e+00> : vector<16xf32>
      %14 = vector.multi_reduction <add>, %11, %cst_14 [1] : vector<16x128xf32> to vector<16xf32>
      %15 = vector.shape_cast %14 : vector<16xf32> to vector<16x1xf32>
      %cst_15 = arith.constant 1.280000e+02 : f32
      %16 = vector.broadcast %cst_15 : f32 to vector<16x1xf32>
      %17 = arith.divf %15, %16 : vector<16x1xf32>
      %18 = vector.broadcast %17 : vector<16x1xf32> to vector<16x128xf32>
      %19 = arith.subf %11, %18 : vector<16x128xf32>
      %20 = arith.mulf %19, %19 : vector<16x128xf32>
      %cst_16 = arith.constant dense<0.000000e+00> : vector<16xf32>
      %21 = vector.multi_reduction <add>, %20, %cst_16 [1] : vector<16x128xf32> to vector<16xf32>
      %22 = vector.shape_cast %21 : vector<16xf32> to vector<16x1xf32>
      %cst_17 = arith.constant 1.280000e+02 : f32
      %23 = vector.broadcast %cst_17 : f32 to vector<16x1xf32>
      %24 = arith.divf %22, %23 : vector<16x1xf32>
      %25 = vector.broadcast %17 : vector<16x1xf32> to vector<16x128xf32>
      %26 = arith.subf %11, %25 : vector<16x128xf32>
      %cst_18 = arith.constant 9.99999974E-6 : f32
      %27 = vector.broadcast %cst_18 : f32 to vector<16x1xf32>
      %28 = arith.addf %24, %27 : vector<16x1xf32>
      %29 = math.rsqrt %28 : vector<16x1xf32>
      %30 = vector.broadcast %29 : vector<16x1xf32> to vector<16x128xf32>
      %31 = arith.mulf %26, %30 : vector<16x128xf32>
      %32 = vector.broadcast %12 : vector<1x128xf32> to vector<16x128xf32>
      %33 = arith.mulf %31, %32 : vector<16x128xf32>
      %34 = vector.broadcast %13 : vector<1x128xf32> to vector<16x128xf32>
      %35 = arith.addf %33, %34 : vector<16x128xf32>
      %36 = arith.truncf %35 : vector<16x128xf32> to vector<16x128xbf16>
      %c0_19 = arith.constant 0 : index
      %c0_20 = arith.constant 0 : index
      %37 = vector.load %arg8[%c0_19, %c0_20] : memref<16x128xbf16, #tpu.memory_space<vmem>>, vector<16x128xbf16>
      tpu.vector_store %arg8[%c0_19, %c0_20], %36 {strides = array<i32>} : memref<16x128xbf16, #tpu.memory_space<vmem>>, vector<16x128xbf16>,
    } else {
    }
    %c0 = arith.constant 0 : index
    %c0_1 = arith.constant 0 : index
    %3 = vector.load %arg8[%c0, %c0_1] : memref<16x128xbf16, #tpu.memory_space<vmem>>, vector<16x128xbf16>
    %c0_2 = arith.constant 0 : index
    %c0_3 = arith.constant 0 : index
    %4 = vector.load %arg5[%c0_2, %c0_3] : memref<128x384xbf16, #tpu.memory_space<vmem>>, vector<128x384xbf16>
    %cst = arith.constant dense<0.000000e+00> : vector<16x384xf32>
    %5 = tpu.matmul %3, %4, %cst {dimension_numbers = #tpu.dot_dimension_numbers<[1], [0], [0], [1], [0, 0, 1, 1], [], []>} : vector<16x128xbf16>, vector<128x384xbf16>, vector<16x384xf32> -> vector<16x384xf32>
    %c0_4 = arith.constant 0 : index
    %c0_5 = arith.constant 0 : index
    %6 = vector.load %arg6[%c0_4, %c0_5] : memref<1x384xf32, #tpu.memory_space<vmem>>, vector<1x384xf32>
    %7 = vector.broadcast %6 : vector<1x384xf32> to vector<16x384xf32>
    %8 = arith.addf %5, %7 : vector<16x384xf32>
    %9 = arith.truncf %8 : vector<16x384xf32> to vector<16x384xbf16>
    %c0_6 = arith.constant 0 : index
    %c0_7 = arith.constant 0 : index
    %10 = vector.load %arg7[%c0_6, %c0_7] : memref<16x384xbf16, #tpu.memory_space<vmem>>, vector<16x384xbf16>
    tpu.vector_store %arg7[%c0_6, %c0_7], %9 {strides = array<i32>} : memref<16x384xbf16, #tpu.memory_space<vmem>>, vector<16x384xbf16>,
    return
  }
  func.func @transform_0(%arg0: i32, %arg1: i32) -> (i32, i32) {
    %c0_i32 = arith.constant 0 : i32
    %c0_i32_0 = arith.constant 0 : i32
    return %arg0, %c0_i32 : i32, i32
  }
  func.func @transform_1(%arg0: i32, %arg1: i32) -> (i32, i32) {
    %c0_i32 = arith.constant 0 : i32
    %c0_i32_0 = arith.constant 0 : i32
    %c0_i32_1 = arith.constant 0 : i32
    return %c0_i32, %c0_i32_0 : i32, i32
  }
  func.func @transform_2(%arg0: i32, %arg1: i32) -> (i32, i32) {
    %c0_i32 = arith.constant 0 : i32
    %c0_i32_0 = arith.constant 0 : i32
    %c0_i32_1 = arith.constant 0 : i32
    return %c0_i32, %c0_i32_0 : i32, i32
  }
  func.func @transform_3(%arg0: i32, %arg1: i32) -> (i32, i32) {
    %c0_i32 = arith.constant 0 : i32
    %c0_i32_0 = arith.constant 0 : i32
    return %c0_i32, %arg1 : i32, i32
  }
  func.func @transform_4(%arg0: i32, %arg1: i32) -> (i32, i32) {
    %c0_i32 = arith.constant 0 : i32
    %c0_i32_0 = arith.constant 0 : i32
    return %c0_i32, %arg1 : i32, i32
  }
  func.func @transform_5(%arg0: i32, %arg1: i32) -> (i32, i32) {
    %c0_i32 = arith.constant 0 : i32
    return %arg0, %arg1 : i32, i32
  }
}

</mosaic_0001>

<bundles_post_ra>
// kernel: tpu_custom_call.1
= control target key start
LH: loop header
LB: loop body
LE: loop exit
PB: predicated region body
PF: predicated region fallthrough
CT: control target
= control target key end

     0   :  { %10 = vsyncpa [#allocation4], 0  ;;  %s694_s0 = inlined_call_operand.hbm [shape: f32[16,128], index: 0, kind: input, shape index: {}]   ;;  %s695_s1 = inlined_call_operand.vmem [shape: f32[1,128], index: 1, kind: input, shape index: {}]   ;;  %s696_s2 = inlined_call_operand.vmem [shape: f32[1,128], index: 2, kind: input, shape index: {}]   ;;  %s697_s3 = inlined_call_operand.hbm [shape: bf16[128,384], index: 3, kind: input, shape index: {}]   ;;  %s698_s4 = inlined_call_operand.vmem [shape: f32[1,384], index: 4, kind: input, shape index: {}]   ;;  %s699_s5 = inlined_call_operand.hbm [shape: bf16[16,384], index: 5, kind: output, shape index: {}]  }
   0x1   :  { %11 = vsyncpa [#allocation7], 0 }
   0x2   :  { %12 = vsyncpa [#allocation5], 0  ;;  %s584_s18 = smov [#allocation3]   ;;  %s512_s22 = scalar_lea.hbm %s694_s0, 256 }
   0x3   :  { %s18_s19 = sshll.u32 %s584_s18, 4  ;;  %p513_p0 = scmp.ne.s32.totalorder %s694_s0, %s512_s22  ;;  %s19_s19 = int_to_ptr.vmem [resolvable:$true] %s18_s19 }
   0x4   :  { %p516_p1 = scmp.lt.u32.totalorder %s512_s22, %s694_s0 }
   0x6   :  { %p518_p2 = pnand %p516_p1, %p513_p0 }
   0x8   :  { %521 = shalt.err (!%p518_p2)
}
   0x9   :  { %s522_s27 = scalar_lea.vmem %s19_s19, 256  ;;  %p527_p4 = scmp.lt.s32.totalorder %s19_s19, %s19_s19 }
   0xa   :  { %p523_p3 = scmp.ne.s32.totalorder %s19_s19, %s522_s27  ;;  %p528_p5 = scmp.lt.s32.totalorder %s522_s27, %s522_s27 }
   0xc   :  { %p529_p6 = por %p528_p5, %p527_p4 }
   0xe   :  { %p530_p7 = pnand %p529_p6, %p523_p3 }
  0x10   :  { %533 = shalt.err (!%p530_p7)
}
  0x11   :  { %s585_s28 = smov 128   ;;  %s586_s29 = smov 8  }
  0x12   :  { %24 = dma.hbm_to_vmem [thread:$0]  %s694_s0, 256, %s19_s19, [#allocation4], %s585_s28, %s585_s28, %s586_s29  }
  0x13   :  { %s587_s7 = smov [#allocation6]   ;;  %s534_s11 = scalar_lea.hbm %s697_s3, 3072 }
  0x14   :  { %s34_s8 = sshll.u32 %s587_s7, 4  ;;  %p535_p8 = scmp.ne.s32.totalorder %s697_s3, %s534_s11  ;;  %s35_s8 = int_to_ptr.vmem [resolvable:$true] %s34_s8 }
  0x15   :  { %p538_p9 = scmp.lt.u32.totalorder %s534_s11, %s697_s3 }
  0x17   :  { %p540_p10 = pnand %p538_p9, %p535_p8 }
  0x19   :  { %543 = shalt.err (!%p540_p10)
}
  0x1a   :  { %s544_s16 = scalar_lea.vmem %s35_s8, 3072  ;;  %p549_p12 = scmp.lt.s32.totalorder %s35_s8, %s35_s8 }
  0x1b   :  { %p545_p11 = scmp.ne.s32.totalorder %s35_s8, %s544_s16  ;;  %p550_p13 = scmp.lt.s32.totalorder %s544_s16, %s544_s16 }
  0x1d   :  { %p551_p0 = por %p550_p13, %p549_p12 }
  0x1f   :  { %p552_p1 = pnand %p551_p0, %p545_p11 }
  0x21   :  { %555 = shalt.err (!%p552_p1)
}
  0x22   :  { %s588_s0 = smov 192   ;;  %s589_s17 = smov 12  }
  0x23   :  { %40 = dma.hbm_to_vmem [thread:$0]  %s697_s3, 3072, %s35_s8, [#allocation7], %s588_s0, %s588_s0, %s589_s17  }
  0x24   :  { %578 = dma.done.wait [#allocation4], 256  }
  0x25   :  { %579 = vsyncadd [#allocation4], 4294967040 }
  0x26   :  { %580 = dma.done.wait [#allocation7], 3072  }
  0x27   :  { %581 = vsyncadd [#allocation7], 4294964224  ;;  %v54_v0 = vld [vmem:[#allocation3] sm:$0xff]  ;;  %v55_v1 = vld [vmem:[#allocation3 + $0x8] sm:$0xff]  ;;  %v590_v4 = vmov 0.0   ;;  %v591_v30 = vmov 0   ;;  %v134_v53 = vlaneseq }
  0x28   :  { %58 = vadd.xlane.f32.xlu0 %v54_v0  ;;  %v476_v2 = vld [vmem:[#allocation6 + $0x4] ss:$12 sps:$4 sm:$0xff]   ;;  %v478_v3 = vld [vmem:[#allocation6] ss:$12 sps:$4 sm:$0xff]   ;;  %446 = vmatprep.subr.bf16.mxu1 %v590_v4  ;;  %v479_v5 = vld [vmem:[#allocation6 + $0x8] ss:$12 sps:$4 sm:$0xff]  }
  0x29   :  { %v480_v6 = vld [vmem:[#allocation6 + $0x1c] ss:$12 sps:$4 sm:$0xff]   ;;  %277 = vmatprep.subr.bf16.mxu0 %v476_v2  ;;  %447 = vmatpush3.bf16.msra.mxu1 %v479_v5  ;;  %v482_v15 = vld [vmem:[#allocation6 + $0x18] ss:$12 sps:$4 sm:$0xff]   ;;  %v483_v16 = vld [vmem:[#allocation6 + $0x20] ss:$12 sps:$4 sm:$0xff]  }
  0x2a   :  { %278 = vmatpush1.bf16.msra.mxu0 %v478_v3  ;;  %448 = vmatprep.subr.bf16.mxu1 %v590_v4  ;;  %v484_v17 = vld [vmem:[#allocation6 + $0x34] ss:$12 sps:$4 sm:$0xff]   ;;  %v486_v18 = vld [vmem:[#allocation6 + $0x30] ss:$12 sps:$4 sm:$0xff]   ;;  %v487_v19 = vld [vmem:[#allocation6 + $0x38] ss:$12 sps:$4 sm:$0xff]  }
  0x2b   :  { %279 = vmatprep.subr.bf16.mxu0 %v480_v6  ;;  %v488_v20 = vld [vmem:[#allocation6 + $0x4c] ss:$12 sps:$4 sm:$0xff]   ;;  %v490_v21 = vld [vmem:[#allocation6 + $0x48] ss:$12 sps:$4 sm:$0xff]   ;;  %v491_v22 = vld [vmem:[#allocation6 + $0x50] ss:$12 sps:$4 sm:$0xff]   ;;  %309 = vmatprep.mubr.bf16.mxu0 %v591_v30 }
  0x2c   :  { %60 = vadd.xlane.f32.xlu0 %v55_v1  ;;  %v492_v23 = vld [vmem:[#allocation6 + $0x64] ss:$12 sps:$4 sm:$0xff]   ;;  %v494_v24 = vld [vmem:[#allocation6 + $0x60] ss:$12 sps:$4 sm:$0xff]   ;;  %v495_v25 = vld [vmem:[#allocation6 + $0x68] ss:$12 sps:$4 sm:$0xff]  }
  0x2d   :  { %449 = vmatpush3.bf16.msra.mxu1 %v483_v16  ;;  %v496_v26 = vld [vmem:[#allocation6 + $0x7c] ss:$12 sps:$4 sm:$0xff]   ;;  %v498_v27 = vld [vmem:[#allocation6 + $0x78] ss:$12 sps:$4 sm:$0xff]   ;;  %v499_v28 = vld [vmem:[#allocation6 + $0x80] ss:$12 sps:$4 sm:$0xff]  }
  0x2e   :  { %280 = vmatpush1.bf16.msra.mxu0 %v482_v15  ;;  %450 = vmatprep.subr.bf16.mxu1 %v590_v4  ;;  %v500_v29 = vld [vmem:[#allocation6 + $0x94] ss:$12 sps:$4 sm:$0xff]   ;;  %vm592_vm0 = vmmov 0   ;;  %v502_v31 = vld [vmem:[#allocation6 + $0x90] ss:$12 sps:$4 sm:$0xff]   ;;  %v135_v54 = vshrl.u32 %v134_v53, 7 }
  0x2f   :  { %281 = vmatprep.subr.bf16.mxu0 %v484_v17  ;;  %462 = vmatprep.mubr.msk.bf16.mxu1 %vm592_vm0, %v590_v4  ;;  %v503_v32 = vld [vmem:[#allocation6 + $0x98] ss:$12 sps:$4 sm:$0xff]   ;;  %v506_v34 = vld [vmem:[#allocation6 + $0xa8] ss:$12 sps:$4 sm:$0xff]   ;;  %v507_v35 = vld [vmem:[#allocation6 + $0xb0] ss:$12 sps:$4 sm:$0xff]  }
  0x30   :  { %v504_v33 = vld [vmem:[#allocation6 + $0xac] ss:$12 sps:$4 sm:$0xff]   ;;  %v403_v44 = vld [vmem:[%s695_s1] ss:$0 sm:$0xff]  ;;  %v136_v55 = vsub.s32 0, %v135_v54  ;;  %v144_v56 = vsub.s32 2, %v135_v54 }
  0x31   :  { %451 = vmatpush3.bf16.msra.mxu1 %v487_v19  ;;  %v404_v48 = vld [vmem:[%s696_s2] ss:$0 sm:$0xff]  ;;  %v140_v58 = vsub.s32 1, %v135_v54  ;;  %s593_s2 = smov [#allocation8]  }
  0x32   :  { %282 = vmatpush1.bf16.msra.mxu0 %v486_v18  ;;  %452 = vmatprep.subr.bf16.mxu1 %v590_v4  ;;  %v132_v57 = vld [vmem:[%s698_s4] sm:$0x7]  ;;  %s390_s4 = sshll.u32 %s593_s2, 4  ;;  %s391_s4 = int_to_ptr.vmem [resolvable:$true] %s390_s4 }
  0x33   :  { %283 = vmatprep.subr.bf16.mxu0 %v488_v20  ;;  %v137_v59 = vrot.slane %v132_v57, %v136_v55  ;;  %v145_v60 = vrot.slane %v132_v57, %v144_v56  ;;  %v141_v61 = vrot.slane %v132_v57, %v140_v58  ;;  %s556_s24 = scalar_lea.vmem %s391_s4, 384  ;;  %p561_p3 = scmp.lt.s32.totalorder %s391_s4, %s391_s4 }
  0x34   :  { %p557_p2 = scmp.ne.s32.totalorder %s391_s4, %s556_s24  ;;  %p562_p4 = scmp.lt.s32.totalorder %s556_s24, %s556_s24 }
  0x35   :  { %453 = vmatpush3.bf16.msra.mxu1 %v491_v22 }
  0x36   :  { %284 = vmatpush1.bf16.msra.mxu0 %v490_v21  ;;  %454 = vmatprep.subr.bf16.mxu1 %v590_v4  ;;  %p563_p5 = por %p562_p4, %p561_p3 }
  0x37   :  { %285 = vmatprep.subr.bf16.mxu0 %v492_v23 }
  0x38   :  { %p564_p6 = pnand %p563_p5, %p557_p2 }
  0x39   :  { %455 = vmatpush3.bf16.msra.mxu1 %v495_v25 }
  0x3a   :  { %286 = vmatpush1.bf16.msra.mxu0 %v494_v24  ;;  %456 = vmatprep.subr.bf16.mxu1 %v590_v4 }
  0x3b   :  { %287 = vmatprep.subr.bf16.mxu0 %v496_v26 }
  0x3d   :  { %457 = vmatpush3.bf16.msra.mxu1 %v499_v28 }
  0x3e   :  { %288 = vmatpush1.bf16.msra.mxu0 %v498_v27  ;;  %458 = vmatprep.subr.bf16.mxu1 %v590_v4 }
  0x3f   :  { %289 = vmatprep.subr.bf16.mxu0 %v500_v29 }
  0x41   :  { %459 = vmatpush3.bf16.msra.mxu1 %v503_v32 }
  0x42   :  { %290 = vmatpush1.bf16.msra.mxu0 %v502_v31  ;;  %460 = vmatprep.subr.bf16.mxu1 %v590_v4 }
  0x43   :  { %291 = vmatprep.subr.bf16.mxu0 %v504_v33 }
  0x45   :  { %461 = vmatpush3.bf16.msra.mxu1 %v507_v35 }
  0x46   :  { %292 = vmatpush1.bf16.msra.mxu0 %v506_v34 }
  0xb5   :  { %v59_v7 = vpop.xlane.xlu0 %58 }
  0xb6   :  { %v63_v8 = vmul.f32 0.0078125, %v59_v7 }
  0xb8   :  { %v653_v9 = vsub.f32 %v54_v0, %v63_v8 }
  0xb9   :  { %v61_v10 = vpop.xlane.xlu0 %60 }
  0xba   :  { %v64_v11 = vmul.f32 0.0078125, %v61_v10  ;;  %v67_v12 = vmul.f32 %v653_v9, %v653_v9 }
  0xbc   :  { %v657_v13 = vsub.f32 %v55_v1, %v64_v11  ;;  %69 = vadd.xlane.f32.xlu1 %v67_v12 }
  0xbe   :  { %v68_v14 = vmul.f32 %v657_v13, %v657_v13 }
  0xc0   :  { %71 = vadd.xlane.f32.xlu1 %v68_v14 }
 0x149   :  { %v70_v36 = vpop.xlane.xlu1 %69 }
 0x14a   :  { %v73_v37 = vmul.f32 0.0078125, %v70_v36 }
 0x14c   :  { %v75_v38 = vadd.f32 1e-05, %v73_v37 }
 0x14d   :  { %v72_v39 = vpop.xlane.xlu1 %71 }
 0x14e   :  { %508 = vrsqrt.f32 %v75_v38  ;;  %v74_v40 = vmul.f32 0.0078125, %v72_v39 }
 0x150   :  { %v76_v41 = vadd.f32 1e-05, %v74_v40 }
 0x152   :  { %510 = vrsqrt.f32 %v76_v41 }
 0x158   :  { %v509_v42 = vpop.eup %508 }
 0x159   :  { %v79_v43 = vmul.f32 %v509_v42, %v653_v9 }
 0x15b   :  { %v87_v47 = vmul.f32 %v403_v44, %v79_v43 }
 0x15c   :  { %v511_v45 = vpop.eup %510 }
 0x15d   :  { %v80_v46 = vmul.f32 %v511_v45, %v657_v13  ;;  %v95_v50 = vadd.f32 %v404_v48, %v87_v47 }
 0x15f   :  { %v88_v49 = vmul.f32 %v403_v44, %v80_v46 }
 0x161   :  { %v96_v51 = vadd.f32 %v404_v48, %v88_v49 }
 0x163   :  { %v97_v52 = vpack.c.bf16 %v96_v51, %v95_v50 }
 0x165   :  { %310 = vmatmul.mubr.bf16.vlgmr.msra.gmra.mrb[0].mxu0 %v97_v52  ;;  %463 = vmatmul.mubr.bf16.vlgmr.msra.gmra.mrb[0].mxu1 %v97_v52 }
 0x238   :  { %v311_v62 = vpop.f32.mrb[0].mxu0  ;;  %v354_v63 = vpop.f32.mrb[0].mxu1 }
 0x239   :  { %v312_v0 = vadd.f32 %v311_v62, %v137_v59  ;;  %v355_v1 = vadd.f32 %v354_v63, %v145_v60  ;;  %v313_v2 = vpop.f32.mrb[1].mxu0  ;;  %v464_v3 = vpop.f32.mrb[1].mxu1 }
 0x23a   :  { %v314_v4 = vadd.f32 %v313_v2, %v141_v61  ;;  %v315_v5 = vpop.f32.mrb[2].mxu0  ;;  %v357_v6 = vpop.f32.mrb[2].mxu1 }
 0x23b   :  { %v434_v7 = vpack.c.bf16 %v355_v1, %v355_v1  ;;  %v316_v8 = vadd.f32 %v315_v5, %v137_v59  ;;  %v358_v9 = vadd.f32 %v357_v6, %v145_v60  ;;  %v317_v10 = vpop.f32.mrb[3].mxu0  ;;  %v465_v11 = vpop.f32.mrb[3].mxu1 }
 0x23c   :  { %v433_v12 = vpack.c.bf16 %v314_v4, %v312_v0  ;;  %v318_v13 = vadd.f32 %v317_v10, %v141_v61 }
 0x23d   :  { %382 = vst [vmem:[#allocation8 + $0x8] sm:$0xf] %v434_v7  ;;  %v436_v14 = vpack.c.bf16 %v358_v9, %v358_v9 }
 0x23e   :  { %381 = vst [vmem:[#allocation8] sm:$0xff] %v433_v12  ;;  %v435_v15 = vpack.c.bf16 %v318_v13, %v316_v8 }
 0x23f   :  { %384 = vst [vmem:[#allocation8 + $0x14] sm:$0xf] %v436_v14 }
 0x240   :  { %383 = vst [vmem:[#allocation8 + $0xc] sm:$0xff] %v435_v15 }
 0x241   :  { %567 = shalt.err (!%p564_p6)
}
 0x242   :  { %s568_s27 = scalar_lea.hbm %s699_s5, 384 }
 0x243   :  { %p569_p7 = scmp.ne.s32.totalorder %s699_s5, %s568_s27  ;;  %p572_p8 = scmp.lt.u32.totalorder %s568_s27, %s699_s5 }
 0x245   :  { %p574_p9 = pnand %p572_p8, %p569_p7 }
 0x247   :  { %577 = shalt.err (!%p574_p9)
}
 0x248   :  { %396 = dma.vmem_to_hbm [thread:$0]  %s391_s4, 384, %s699_s5, [#allocation5], %s588_s0, %s588_s0, %s589_s17  }
 0x249   :  { %582 = dma.done.wait [#allocation5], 384  }
 0x24a   :  { %583 = vsyncadd [#allocation5], 4294966912 }
 0x24b   :  { %400 = vsyncpa [#allocation4], 1 }
 0x24c   :  { %401 = vsyncpa [#allocation7], 1 }
 0x24d   :  { %402 = vsyncpa [#allocation5], 1 }

</bundles_post_ra>
